<compile_context>
chip_gen: v7x
topology: tpu7x:2x2x1
jax: 0.10.0
libtpu: 0.0.40
codegen_flags: <defaults>
</compile_context>

<pallas_src>
import jax
import jax.numpy as jnp
import numpy as np
from jax import lax
from jax.experimental import pallas as pl
from jax.experimental.pallas import tpu as pltpu


# ----------------------------- Pallas kernel ------------------------------ #
def _recurrence_kernel(u_ref, w_rec_t_ref, h_out_ref, h_carry):
    """One grid step == one chunk of T_CHUNK timesteps (time-major).

    u_ref:       (T_CHUNK, B, H)  pre-computed input projection x_t @ W_in^T
    w_rec_t_ref: (H, H)           pre-transposed recurrent weight (W_rec^T)
    h_out_ref:   (T_CHUNK, B, H)  per-step hidden states (output)
    h_carry:     (B, H)           VMEM scratch carrying h across chunks
    """
    c = pl.program_id(0)

    @pl.when(c == 0)
    def _():
        h_carry[...] = jnp.zeros_like(h_carry)

    t_chunk = u_ref.shape[0]          # static block shape
    w_rec_t = w_rec_t_ref[...]        # loaded once per chunk (resident anyway)

    def step(t, h):
        h_new = jnp.maximum(
            u_ref[t]
            + jnp.dot(h, w_rec_t, preferred_element_type=jnp.float32),
            0.0,
        )
        h_out_ref[t] = h_new
        return h_new

    # Unrolled so the LLO scheduler sees the whole chunk.
    h_carry[...] = lax.fori_loop(0, t_chunk, step, h_carry[...], unroll=True)


def _pick_chunk(T, max_chunk=16):
    """Largest divisor of T that is <= max_chunk (keeps blocks exact)."""
    c = min(T, max_chunk)
    while T % c:
        c -= 1
    return c


def proj_net_forward(inputs, w_in, w_rec, w_out, b_out, *, t_chunk=None):
    """inputs: (B, T, D_in) float32  ->  (B, T, D_out) float32."""
    B, T, D_in = inputs.shape
    H = w_rec.shape[0]
    D_out = w_out.shape[0]

    if t_chunk is None:
        t_chunk = _pick_chunk(T)
    assert T % t_chunk == 0, "t_chunk must divide T"

    # Pre-transpose weights once (MXU consumes (K, N) directly; review item 1).
    w_in_t = jnp.transpose(w_in)      # (D_in, H)
    w_rec_t = jnp.transpose(w_rec)    # (H, H)
    w_out_t = jnp.transpose(w_out)    # (H, D_out)

    # Hoisted input projection: one big matmul, produced directly time-major
    # (also removes the separate (B,T,D)->(T,B,D) transpose pass).
    u = jnp.einsum("btd,dh->tbh", inputs, w_in_t,
                   preferred_element_type=jnp.float32)       # (T, B, H)

    # Serial recurrence in Pallas, T_CHUNK timesteps per grid step.
    # NOTE(v7x): at large B one could add a leading "parallel" batch grid axis
    # to shard the recurrence across the two TensorCores; pointless at B=2.
    h_tm = pl.pallas_call(
        _recurrence_kernel,
        out_shape=jax.ShapeDtypeStruct((T, B, H), jnp.float32),
        grid_spec=pltpu.PrefetchScalarGridSpec(
            num_scalar_prefetch=0,
            grid=(T // t_chunk,),
            in_specs=[
                pl.BlockSpec((t_chunk, B, H), lambda c: (c, 0, 0)),
                pl.BlockSpec((H, H), lambda c: (0, 0)),
            ],
            out_specs=pl.BlockSpec((t_chunk, B, H), lambda c: (c, 0, 0)),
            scratch_shapes=[pltpu.VMEM((B, H), jnp.float32)],
        ),
        compiler_params=pltpu.CompilerParams(
            dimension_semantics=("arbitrary",),   # time recurrence: sequential
        ),
    )(u, w_rec_t)

    # Hoisted readout + bias: one big matmul, off the serial critical path.
    y = jnp.einsum("tbh,ho->bto", h_tm, w_out_t,
                   preferred_element_type=jnp.float32) + b_out
    return y


# ------------------------- deterministic init ------------------------------ #
def henaff_init(key, n):
    """Block-diagonal 2x2 rotations (orthogonal), Henaff-style."""
    assert n % 2 == 0, "henaff_init requires an even hidden size"
    angles = jax.random.uniform(key, (n // 2,), minval=-np.pi, maxval=np.pi)
    c, s = jnp.cos(angles), jnp.sin(angles)
    W = jnp.zeros((n, n), jnp.float32)
    i = jnp.arange(n // 2) * 2
    W = W.at[i, i].set(c).at[i, i + 1].set(-s).at[i + 1, i].set(s).at[i + 1, i + 1].set(c)
    return W


def xavier_uniform(key, out_f, in_f):
    limit = float(np.sqrt(6.0 / (in_f + out_f)))
    return jax.random.uniform(key, (out_f, in_f), jnp.float32, -limit, limit)


def kaiming_normal_relu(key, out_f, in_f):
    std = float(np.sqrt(2.0 / in_f))
    return jax.random.normal(key, (out_f, in_f), jnp.float32) * std


# -------------------------------- reference -------------------------------- #
def _reference(inputs, w_in, w_rec, w_out, b_out):
    B, T, _ = inputs.shape
    H = w_rec.shape[0]
    h = jnp.zeros((B, H), jnp.float32)
    outs = []
    for t in range(T):
        h = jnp.maximum(inputs[:, t] @ w_in.T + h @ w_rec.T, 0.0)
        outs.append(h @ w_out.T + b_out)
    return jnp.stack(outs, axis=1)


if __name__ == "__main__":
    n_classes = 9
    input_size = n_classes + 1        # 10
    output_size = n_classes           # 9
    hidden_size = 32
    B, T = 2, 8

    key = jax.random.PRNGKey(0)
    k_x, k_rec, k_in, k_out = jax.random.split(key, 4)

    x = jax.random.normal(k_x, (B, T, input_size), jnp.float32)
    w_rec = henaff_init(k_rec, hidden_size)                        # recurrent_kernel.weight
    w_in = xavier_uniform(k_in, hidden_size, input_size)           # input_kernel.weight
    w_out = kaiming_normal_relu(k_out, output_size, hidden_size)   # output_layer.weight
    b_out = jnp.zeros((output_size,), jnp.float32)                 # output_layer.bias

    fwd = jax.jit(proj_net_forward, static_argnames=("t_chunk",))

    y = jax.block_until_ready(fwd(x, w_in, w_rec, w_out, b_out))
    y_ref = _reference(x, w_in, w_rec, w_out, b_out)
    np.testing.assert_allclose(np.asarray(y), np.asarray(y_ref), rtol=1e-5, atol=1e-5)

    # Also exercise the cross-chunk hidden-state carry (grid > 1).
    y2 = jax.block_until_ready(fwd(x, w_in, w_rec, w_out, b_out, t_chunk=2))
    np.testing.assert_allclose(np.asarray(y2), np.asarray(y_ref), rtol=1e-5, atol=1e-5)

    print("KERNEL_OK")
</pallas_src>

<mosaic_0001>
module attributes {stable_mosaic.version = 11 : i64} {
  func.func @_recurrence_kernel(%arg0: i32, %arg1: memref<8x2x32xf32, #tpu.memory_space<vmem>>, %arg2: memref<32x32xf32, #tpu.memory_space<vmem>>, %arg3: memref<8x2x32xf32, #tpu.memory_space<vmem>>, %arg4: memref<2x32xf32, #tpu.memory_space<vmem>>) attributes {dimension_semantics = [#tpu.dimension_semantics<arbitrary>], iteration_bounds = array<i64: 1>, scalar_prefetch = 0 : i64, scratch_operands = 1 : i64, tpu.core_type = #tpu.core_type<tc>, window_params = [{transform_indices = @transform_0, window_bounds = array<i64: 8, 2, 32>}, {pipeline_mode = #tpu.pipeline_mode<synchronous>, transform_indices = @transform_1, window_bounds = array<i64: 32, 32>}, {transform_indices = @transform_2, window_bounds = array<i64: 8, 2, 32>}]} {
    %c0_i32 = arith.constant 0 : i32
    %0 = arith.cmpi eq, %arg0, %c0_i32 : i32
    %1 = arith.extui %0 : i1 to i32
    %c0_i32_0 = arith.constant 0 : i32
    %2 = arith.cmpi ne, %1, %c0_i32_0 : i32
    scf.if %2 {
      %cst_54 = arith.constant 0.000000e+00 : f32
      %94 = vector.broadcast %cst_54 : f32 to vector<2x32xf32>
      %c0_55 = arith.constant 0 : index
      %c0_56 = arith.constant 0 : index
      %95 = vector.load %arg4[%c0_55, %c0_56] : memref<2x32xf32, #tpu.memory_space<vmem>>, vector<2x32xf32>
      tpu.vector_store %arg4[%c0_55, %c0_56], %94 {strides = array<i32>} : memref<2x32xf32, #tpu.memory_space<vmem>>, vector<2x32xf32>,
    } else {
    }
    %c0 = arith.constant 0 : index
    %c0_1 = arith.constant 0 : index
    %3 = vector.load %arg2[%c0, %c0_1] : memref<32x32xf32, #tpu.memory_space<vmem>>, vector<32x32xf32>
    %c0_2 = arith.constant 0 : index
    %c0_3 = arith.constant 0 : index
    %4 = vector.load %arg4[%c0_2, %c0_3] : memref<2x32xf32, #tpu.memory_space<vmem>>, vector<2x32xf32>
    %c0_i32_4 = arith.constant 0 : i32
    %5 = arith.index_cast %c0_i32_4 : i32 to index
    %c0_5 = arith.constant 0 : index
    %c0_6 = arith.constant 0 : index
    %6 = vector.load %arg1[%5, %c0_5, %c0_6] : memref<8x2x32xf32, #tpu.memory_space<vmem>>, vector<1x2x32xf32>
    %7 = vector.shape_cast %6 : vector<1x2x32xf32> to vector<2x32xf32>
    %cst = arith.constant dense<0.000000e+00> : vector<2x32xf32>
    %8 = tpu.matmul %4, %3, %cst {dimension_numbers = #tpu.dot_dimension_numbers<[1], [0], [0], [1], [0, 0, 1, 1], [], []>} : vector<2x32xf32>, vector<32x32xf32>, vector<2x32xf32> -> vector<2x32xf32>
    %9 = arith.addf %7, %8 : vector<2x32xf32>
    %cst_7 = arith.constant 0.000000e+00 : f32
    %10 = vector.broadcast %cst_7 : f32 to vector<2x32xf32>
    %11 = arith.maximumf %9, %10 : vector<2x32xf32>
    %12 = arith.index_cast %c0_i32_4 : i32 to index
    %c0_8 = arith.constant 0 : index
    %c0_9 = arith.constant 0 : index
    %13 = vector.load %arg3[%12, %c0_8, %c0_9] : memref<8x2x32xf32, #tpu.memory_space<vmem>>, vector<1x2x32xf32>
    %14 = vector.shape_cast %13 : vector<1x2x32xf32> to vector<2x32xf32>
    %15 = vector.shape_cast %11 : vector<2x32xf32> to vector<1x2x32xf32>
    tpu.vector_store %arg3[%12, %c0_8, %c0_9], %15 {strides = array<i32>} : memref<8x2x32xf32, #tpu.memory_space<vmem>>, vector<1x2x32xf32>,
    %c1_i32 = arith.constant 1 : i32
    %16 = arith.index_cast %c1_i32 : i32 to index
    %c0_10 = arith.constant 0 : index
    %c0_11 = arith.constant 0 : index
    %17 = vector.load %arg1[%16, %c0_10, %c0_11] : memref<8x2x32xf32, #tpu.memory_space<vmem>>, vector<1x2x32xf32>
    %18 = vector.shape_cast %17 : vector<1x2x32xf32> to vector<2x32xf32>
    %cst_12 = arith.constant dense<0.000000e+00> : vector<2x32xf32>
    %19 = tpu.matmul %11, %3, %cst_12 {dimension_numbers = #tpu.dot_dimension_numbers<[1], [0], [0], [1], [0, 0, 1, 1], [], []>} : vector<2x32xf32>, vector<32x32xf32>, vector<2x32xf32> -> vector<2x32xf32>
    %20 = arith.addf %18, %19 : vector<2x32xf32>
    %cst_13 = arith.constant 0.000000e+00 : f32
    %21 = vector.broadcast %cst_13 : f32 to vector<2x32xf32>
    %22 = arith.maximumf %20, %21 : vector<2x32xf32>
    %23 = arith.index_cast %c1_i32 : i32 to index
    %c0_14 = arith.constant 0 : index
    %c0_15 = arith.constant 0 : index
    %24 = vector.load %arg3[%23, %c0_14, %c0_15] : memref<8x2x32xf32, #tpu.memory_space<vmem>>, vector<1x2x32xf32>
    %25 = vector.shape_cast %24 : vector<1x2x32xf32> to vector<2x32xf32>
    %26 = vector.shape_cast %22 : vector<2x32xf32> to vector<1x2x32xf32>
    tpu.vector_store %arg3[%23, %c0_14, %c0_15], %26 {strides = array<i32>} : memref<8x2x32xf32, #tpu.memory_space<vmem>>, vector<1x2x32xf32>,
    %c2_i32 = arith.constant 2 : i32
    %27 = arith.index_cast %c2_i32 : i32 to index
    %c0_16 = arith.constant 0 : index
    %c0_17 = arith.constant 0 : index
    %28 = vector.load %arg1[%27, %c0_16, %c0_17] : memref<8x2x32xf32, #tpu.memory_space<vmem>>, vector<1x2x32xf32>
    %29 = vector.shape_cast %28 : vector<1x2x32xf32> to vector<2x32xf32>
    %cst_18 = arith.constant dense<0.000000e+00> : vector<2x32xf32>
    %30 = tpu.matmul %22, %3, %cst_18 {dimension_numbers = #tpu.dot_dimension_numbers<[1], [0], [0], [1], [0, 0, 1, 1], [], []>} : vector<2x32xf32>, vector<32x32xf32>, vector<2x32xf32> -> vector<2x32xf32>
    %31 = arith.addf %29, %30 : vector<2x32xf32>
    %cst_19 = arith.constant 0.000000e+00 : f32
    %32 = vector.broadcast %cst_19 : f32 to vector<2x32xf32>
    %33 = arith.maximumf %31, %32 : vector<2x32xf32>
    %34 = arith.index_cast %c2_i32 : i32 to index
    %c0_20 = arith.constant 0 : index
    %c0_21 = arith.constant 0 : index
    %35 = vector.load %arg3[%34, %c0_20, %c0_21] : memref<8x2x32xf32, #tpu.memory_space<vmem>>, vector<1x2x32xf32>
    %36 = vector.shape_cast %35 : vector<1x2x32xf32> to vector<2x32xf32>
    %37 = vector.shape_cast %33 : vector<2x32xf32> to vector<1x2x32xf32>
    tpu.vector_store %arg3[%34, %c0_20, %c0_21], %37 {strides = array<i32>} : memref<8x2x32xf32, #tpu.memory_space<vmem>>, vector<1x2x32xf32>,
    %c3_i32 = arith.constant 3 : i32
    %38 = arith.index_cast %c3_i32 : i32 to index
    %c0_22 = arith.constant 0 : index
    %c0_23 = arith.constant 0 : index
    %39 = vector.load %arg1[%38, %c0_22, %c0_23] : memref<8x2x32xf32, #tpu.memory_space<vmem>>, vector<1x2x32xf32>
    %40 = vector.shape_cast %39 : vector<1x2x32xf32> to vector<2x32xf32>
    %cst_24 = arith.constant dense<0.000000e+00> : vector<2x32xf32>
    %41 = tpu.matmul %33, %3, %cst_24 {dimension_numbers = #tpu.dot_dimension_numbers<[1], [0], [0], [1], [0, 0, 1, 1], [], []>} : vector<2x32xf32>, vector<32x32xf32>, vector<2x32xf32> -> vector<2x32xf32>
    %42 = arith.addf %40, %41 : vector<2x32xf32>
    %cst_25 = arith.constant 0.000000e+00 : f32
    %43 = vector.broadcast %cst_25 : f32 to vector<2x32xf32>
    %44 = arith.maximumf %42, %43 : vector<2x32xf32>
    %45 = arith.index_cast %c3_i32 : i32 to index
    %c0_26 = arith.constant 0 : index
    %c0_27 = arith.constant 0 : index
    %46 = vector.load %arg3[%45, %c0_26, %c0_27] : memref<8x2x32xf32, #tpu.memory_space<vmem>>, vector<1x2x32xf32>
    %47 = vector.shape_cast %46 : vector<1x2x32xf32> to vector<2x32xf32>
    %48 = vector.shape_cast %44 : vector<2x32xf32> to vector<1x2x32xf32>
    tpu.vector_store %arg3[%45, %c0_26, %c0_27], %48 {strides = array<i32>} : memref<8x2x32xf32, #tpu.memory_space<vmem>>, vector<1x2x32xf32>,
    %c4_i32 = arith.constant 4 : i32
    %49 = arith.index_cast %c4_i32 : i32 to index
    %c0_28 = arith.constant 0 : index
    %c0_29 = arith.constant 0 : index
    %50 = vector.load %arg1[%49, %c0_28, %c0_29] : memref<8x2x32xf32, #tpu.memory_space<vmem>>, vector<1x2x32xf32>
    %51 = vector.shape_cast %50 : vector<1x2x32xf32> to vector<2x32xf32>
    %cst_30 = arith.constant dense<0.000000e+00> : vector<2x32xf32>
    %52 = tpu.matmul %44, %3, %cst_30 {dimension_numbers = #tpu.dot_dimension_numbers<[1], [0], [0], [1], [0, 0, 1, 1], [], []>} : vector<2x32xf32>, vector<32x32xf32>, vector<2x32xf32> -> vector<2x32xf32>
    %53 = arith.addf %51, %52 : vector<2x32xf32>
    %cst_31 = arith.constant 0.000000e+00 : f32
    %54 = vector.broadcast %cst_31 : f32 to vector<2x32xf32>
    %55 = arith.maximumf %53, %54 : vector<2x32xf32>
    %56 = arith.index_cast %c4_i32 : i32 to index
    %c0_32 = arith.constant 0 : index
    %c0_33 = arith.constant 0 : index
    %57 = vector.load %arg3[%56, %c0_32, %c0_33] : memref<8x2x32xf32, #tpu.memory_space<vmem>>, vector<1x2x32xf32>
    %58 = vector.shape_cast %57 : vector<1x2x32xf32> to vector<2x32xf32>
    %59 = vector.shape_cast %55 : vector<2x32xf32> to vector<1x2x32xf32>
    tpu.vector_store %arg3[%56, %c0_32, %c0_33], %59 {strides = array<i32>} : memref<8x2x32xf32, #tpu.memory_space<vmem>>, vector<1x2x32xf32>,
    %c5_i32 = arith.constant 5 : i32
    %60 = arith.index_cast %c5_i32 : i32 to index
    %c0_34 = arith.constant 0 : index
    %c0_35 = arith.constant 0 : index
    %61 = vector.load %arg1[%60, %c0_34, %c0_35] : memref<8x2x32xf32, #tpu.memory_space<vmem>>, vector<1x2x32xf32>
    %62 = vector.shape_cast %61 : vector<1x2x32xf32> to vector<2x32xf32>
    %cst_36 = arith.constant dense<0.000000e+00> : vector<2x32xf32>
    %63 = tpu.matmul %55, %3, %cst_36 {dimension_numbers = #tpu.dot_dimension_numbers<[1], [0], [0], [1], [0, 0, 1, 1], [], []>} : vector<2x32xf32>, vector<32x32xf32>, vector<2x32xf32> -> vector<2x32xf32>
    %64 = arith.addf %62, %63 : vector<2x32xf32>
    %cst_37 = arith.constant 0.000000e+00 : f32
    %65 = vector.broadcast %cst_37 : f32 to vector<2x32xf32>
    %66 = arith.maximumf %64, %65 : vector<2x32xf32>
    %67 = arith.index_cast %c5_i32 : i32 to index
    %c0_38 = arith.constant 0 : index
    %c0_39 = arith.constant 0 : index
    %68 = vector.load %arg3[%67, %c0_38, %c0_39] : memref<8x2x32xf32, #tpu.memory_space<vmem>>, vector<1x2x32xf32>
    %69 = vector.shape_cast %68 : vector<1x2x32xf32> to vector<2x32xf32>
    %70 = vector.shape_cast %66 : vector<2x32xf32> to vector<1x2x32xf32>
    tpu.vector_store %arg3[%67, %c0_38, %c0_39], %70 {strides = array<i32>} : memref<8x2x32xf32, #tpu.memory_space<vmem>>, vector<1x2x32xf32>,
    %c6_i32 = arith.constant 6 : i32
    %71 = arith.index_cast %c6_i32 : i32 to index
    %c0_40 = arith.constant 0 : index
    %c0_41 = arith.constant 0 : index
    %72 = vector.load %arg1[%71, %c0_40, %c0_41] : memref<8x2x32xf32, #tpu.memory_space<vmem>>, vector<1x2x32xf32>
    %73 = vector.shape_cast %72 : vector<1x2x32xf32> to vector<2x32xf32>
    %cst_42 = arith.constant dense<0.000000e+00> : vector<2x32xf32>
    %74 = tpu.matmul %66, %3, %cst_42 {dimension_numbers = #tpu.dot_dimension_numbers<[1], [0], [0], [1], [0, 0, 1, 1], [], []>} : vector<2x32xf32>, vector<32x32xf32>, vector<2x32xf32> -> vector<2x32xf32>
    %75 = arith.addf %73, %74 : vector<2x32xf32>
    %cst_43 = arith.constant 0.000000e+00 : f32
    %76 = vector.broadcast %cst_43 : f32 to vector<2x32xf32>
    %77 = arith.maximumf %75, %76 : vector<2x32xf32>
    %78 = arith.index_cast %c6_i32 : i32 to index
    %c0_44 = arith.constant 0 : index
    %c0_45 = arith.constant 0 : index
    %79 = vector.load %arg3[%78, %c0_44, %c0_45] : memref<8x2x32xf32, #tpu.memory_space<vmem>>, vector<1x2x32xf32>
    %80 = vector.shape_cast %79 : vector<1x2x32xf32> to vector<2x32xf32>
    %81 = vector.shape_cast %77 : vector<2x32xf32> to vector<1x2x32xf32>
    tpu.vector_store %arg3[%78, %c0_44, %c0_45], %81 {strides = array<i32>} : memref<8x2x32xf32, #tpu.memory_space<vmem>>, vector<1x2x32xf32>,
    %c7_i32 = arith.constant 7 : i32
    %82 = arith.index_cast %c7_i32 : i32 to index
    %c0_46 = arith.constant 0 : index
    %c0_47 = arith.constant 0 : index
    %83 = vector.load %arg1[%82, %c0_46, %c0_47] : memref<8x2x32xf32, #tpu.memory_space<vmem>>, vector<1x2x32xf32>
    %84 = vector.shape_cast %83 : vector<1x2x32xf32> to vector<2x32xf32>
    %cst_48 = arith.constant dense<0.000000e+00> : vector<2x32xf32>
    %85 = tpu.matmul %77, %3, %cst_48 {dimension_numbers = #tpu.dot_dimension_numbers<[1], [0], [0], [1], [0, 0, 1, 1], [], []>} : vector<2x32xf32>, vector<32x32xf32>, vector<2x32xf32> -> vector<2x32xf32>
    %86 = arith.addf %84, %85 : vector<2x32xf32>
    %cst_49 = arith.constant 0.000000e+00 : f32
    %87 = vector.broadcast %cst_49 : f32 to vector<2x32xf32>
    %88 = arith.maximumf %86, %87 : vector<2x32xf32>
    %89 = arith.index_cast %c7_i32 : i32 to index
    %c0_50 = arith.constant 0 : index
    %c0_51 = arith.constant 0 : index
    %90 = vector.load %arg3[%89, %c0_50, %c0_51] : memref<8x2x32xf32, #tpu.memory_space<vmem>>, vector<1x2x32xf32>
    %91 = vector.shape_cast %90 : vector<1x2x32xf32> to vector<2x32xf32>
    %92 = vector.shape_cast %88 : vector<2x32xf32> to vector<1x2x32xf32>
    tpu.vector_store %arg3[%89, %c0_50, %c0_51], %92 {strides = array<i32>} : memref<8x2x32xf32, #tpu.memory_space<vmem>>, vector<1x2x32xf32>,
    %c8_i32 = arith.constant 8 : i32
    %c0_52 = arith.constant 0 : index
    %c0_53 = arith.constant 0 : index
    %93 = vector.load %arg4[%c0_52, %c0_53] : memref<2x32xf32, #tpu.memory_space<vmem>>, vector<2x32xf32>
    tpu.vector_store %arg4[%c0_52, %c0_53], %88 {strides = array<i32>} : memref<2x32xf32, #tpu.memory_space<vmem>>, vector<2x32xf32>,
    return
  }
  func.func @transform_0(%arg0: i32) -> (i32, i32, i32) {
    %c0_i32 = arith.constant 0 : i32
    %c0_i32_0 = arith.constant 0 : i32
    %c0_i32_1 = arith.constant 0 : i32
    return %arg0, %c0_i32, %c0_i32_0 : i32, i32, i32
  }
  func.func @transform_1(%arg0: i32) -> (i32, i32) {
    %c0_i32 = arith.constant 0 : i32
    %c0_i32_0 = arith.constant 0 : i32
    %c0_i32_1 = arith.constant 0 : i32
    return %c0_i32, %c0_i32_0 : i32, i32
  }
  func.func @transform_2(%arg0: i32) -> (i32, i32, i32) {
    %c0_i32 = arith.constant 0 : i32
    %c0_i32_0 = arith.constant 0 : i32
    %c0_i32_1 = arith.constant 0 : i32
    return %arg0, %c0_i32, %c0_i32_0 : i32, i32, i32
  }
}

</mosaic_0001>

<bundles_post_ra>
// kernel: proj_net_forward.1
= control target key start
LH: loop header
LB: loop body
LE: loop exit
PB: predicated region body
PF: predicated region fallthrough
CT: control target
= control target key end

     0   :  { %vm15_vm0 = vcmask 254976   ;;  %v860_v0 = vmov 0.0|0.0   ;;  %vm861_vm1 = vmmov 0   ;;  %v862_v4 = vmov 0.0   ;;  %s1009_s1 = inlined_call_operand.vmem [shape: f32[32,32], index: 1, kind: input, shape index: {}]   ;;  %s1010_s0 = inlined_call_operand.vmem [shape: f32[8,2,32], index: 0, kind: input, shape index: {}]   ;;  %s1011_s2 = inlined_call_operand.vmem [shape: f32[8,2,32], index: 2, kind: output, shape index: {}]  }
   0x1   :  { %809 = vmatprep.subr.bf16.mxu0 %v860_v0  ;;  %v17_v1 = vld [vmem:[%s1009_s1] sm:$0xff]  ;;  %v18_v2 = vld [vmem:[%s1009_s1 + $0x8] sm:$0xff]  ;;  %v19_v3 = vld [vmem:[%s1009_s1 + $0x10] sm:$0xff]  ;;  %729 = vmatprep.mubr.msk.f32.mxu0 %vm861_vm1, %v862_v4  ;;  %16 = vst.msk [vmem:[#allocation2] sm:$0x3] %vm15_vm0, %v862_v4  ;;  %vm23_vm2 = vcmask 261120  }
   0x2   :  { %v892_v5 = vpack.c.bf16 %v18_v2, %v17_v1  ;;  %v20_v6 = vld [vmem:[%s1009_s1 + $0x18] sm:$0xff]  ;;  %815 = vmatprep.subr.bf16.mxu1 %v860_v0  ;;  %740 = vmatprep.mubr.msk.f32.mxu1 %vm861_vm1, %v862_v4  ;;  %v22_v9 = vld [vmem:[%s1010_s0] sm:$0x3]  ;;  %v660_v14 = vld [vmem:[%s1010_s0 + $0x2] sm:$0x3] }
   0x3   :  { %v901_v7 = vpack.c.bf16 %v20_v6, %v19_v3  ;;  %v663_v19 = vld [vmem:[%s1010_s0 + $0x4] sm:$0x3]  ;;  %v666_v24 = vld [vmem:[%s1010_s0 + $0x6] sm:$0x3]  ;;  %v669_v29 = vld [vmem:[%s1010_s0 + $0x8] sm:$0x3] }
   0x4   :  { %811 = vmatpush3.bf16.msra.mxu0 %v892_v5  ;;  %817 = vmatpush3.bf16.msra.mxu1 %v892_v5  ;;  %v672_v34 = vld [vmem:[%s1010_s0 + $0xa] sm:$0x3]  ;;  %v675_v39 = vld [vmem:[%s1010_s0 + $0xc] sm:$0x3]  ;;  %v678_v44 = vld [vmem:[%s1010_s0 + $0xe] sm:$0x3] }
   0x5   :  { %812 = vmatprep.subr.bf16.mxu0 %v860_v0  ;;  %818 = vmatprep.subr.bf16.mxu1 %v860_v0 }
   0x8   :  { %814 = vmatpush3.bf16.msra.mxu0 %v901_v7  ;;  %v21_v8 = vld [vmem:[#allocation2] sm:$0x3]  ;;  %820 = vmatpush3.bf16.msra.mxu1 %v901_v7 }
   0x9   :  { %821 = vmatprep.subr.bf16.mxu0 %v860_v0  ;;  %827 = vmatprep.subr.bf16.mxu1 %v860_v0 }
   0xb   :  { %730 = vmatmul.mubr.msk.f32.vlgmr.msra.gmra.mrb[0].mxu0 %vm23_vm2, %v21_v8 }
   0xc   :  { %823 = vmatpush3.bf16.msra.mxu0 %v892_v5  ;;  %751 = vmatprep.mubr.msk.f32.mxu0 %vm861_vm1, %v862_v4 }
   0xd   :  { %824 = vmatprep.subr.bf16.mxu0 %v860_v0 }
  0x10   :  { %826 = vmatpush3.bf16.msra.mxu0 %v901_v7 }
  0x11   :  { %833 = vmatprep.subr.bf16.mxu0 %v860_v0 }
  0xde   :  { %v93_v10 = vpop.f32.mrb[0].mxu0 }
  0xdf   :  { %v97_v11 = vadd.f32 %v93_v10, %v22_v9  ;;  %v731_v12 = vpop.f32.mrb[1].mxu0 }
  0xe1   :  { %v98_v13 = vmax.f32 %v97_v11, 0.0 }
  0xe3   :  { %100 = vst.msk [vmem:[%s1011_s2] sm:$0x3] %vm15_vm0, %v98_v13  ;;  %741 = vmatmul.mubr.msk.f32.vlgmr.msra.gmra.mrb[0].mxu1 %vm23_vm2, %v98_v13 }
  0xe4   :  { %829 = vmatpush3.bf16.msra.mxu1 %v892_v5  ;;  %762 = vmatprep.mubr.msk.f32.mxu1 %vm861_vm1, %v862_v4 }
  0xe5   :  { %830 = vmatprep.subr.bf16.mxu1 %v860_v0 }
  0xe8   :  { %832 = vmatpush3.bf16.msra.mxu1 %v901_v7 }
  0xe9   :  { %839 = vmatprep.subr.bf16.mxu1 %v860_v0 }
 0x1b6   :  { %v172_v15 = vpop.f32.mrb[0].mxu1 }
 0x1b7   :  { %v176_v16 = vadd.f32 %v660_v14, %v172_v15  ;;  %v742_v17 = vpop.f32.mrb[1].mxu1 }
 0x1b9   :  { %v177_v18 = vmax.f32 %v176_v16, 0.0 }
 0x1bb   :  { %662 = vst.msk [vmem:[%s1011_s2 + $0x2] sm:$0x3] %vm15_vm0, %v177_v18  ;;  %752 = vmatmul.mubr.msk.f32.vlgmr.msra.gmra.mrb[2].mxu0 %vm23_vm2, %v177_v18 }
 0x1bc   :  { %835 = vmatpush3.bf16.msra.mxu0 %v892_v5  ;;  %773 = vmatprep.mubr.msk.f32.mxu0 %vm861_vm1, %v862_v4 }
 0x1bd   :  { %836 = vmatprep.subr.bf16.mxu0 %v860_v0 }
 0x1c0   :  { %838 = vmatpush3.bf16.msra.mxu0 %v901_v7 }
 0x1c1   :  { %845 = vmatprep.subr.bf16.mxu0 %v860_v0 }
 0x28e   :  { %v251_v20 = vpop.f32.mrb[2].mxu0 }
 0x28f   :  { %v255_v21 = vadd.f32 %v663_v19, %v251_v20  ;;  %v753_v22 = vpop.f32.mrb[3].mxu0 }
 0x291   :  { %v256_v23 = vmax.f32 %v255_v21, 0.0 }
 0x293   :  { %665 = vst.msk [vmem:[%s1011_s2 + $0x4] sm:$0x3] %vm15_vm0, %v256_v23  ;;  %763 = vmatmul.mubr.msk.f32.vlgmr.msra.gmra.mrb[2].mxu1 %vm23_vm2, %v256_v23 }
 0x294   :  { %841 = vmatpush3.bf16.msra.mxu1 %v892_v5  ;;  %784 = vmatprep.mubr.msk.f32.mxu1 %vm861_vm1, %v862_v4 }
 0x295   :  { %842 = vmatprep.subr.bf16.mxu1 %v860_v0 }
 0x298   :  { %844 = vmatpush3.bf16.msra.mxu1 %v901_v7 }
 0x299   :  { %851 = vmatprep.subr.bf16.mxu1 %v860_v0 }
 0x366   :  { %v330_v25 = vpop.f32.mrb[2].mxu1 }
 0x367   :  { %v334_v26 = vadd.f32 %v666_v24, %v330_v25  ;;  %v764_v27 = vpop.f32.mrb[3].mxu1 }
 0x369   :  { %v335_v28 = vmax.f32 %v334_v26, 0.0 }
 0x36b   :  { %668 = vst.msk [vmem:[%s1011_s2 + $0x6] sm:$0x3] %vm15_vm0, %v335_v28  ;;  %774 = vmatmul.mubr.msk.f32.vlgmr.msra.gmra.mrb[4].mxu0 %vm23_vm2, %v335_v28 }
 0x36c   :  { %847 = vmatpush3.bf16.msra.mxu0 %v892_v5  ;;  %795 = vmatprep.mubr.msk.f32.mxu0 %vm861_vm1, %v862_v4 }
 0x36d   :  { %848 = vmatprep.subr.bf16.mxu0 %v860_v0 }
 0x370   :  { %850 = vmatpush3.bf16.msra.mxu0 %v901_v7 }
 0x43e   :  { %v409_v30 = vpop.f32.mrb[4].mxu0 }
 0x43f   :  { %v413_v31 = vadd.f32 %v669_v29, %v409_v30  ;;  %v775_v32 = vpop.f32.mrb[5].mxu0 }
 0x441   :  { %v414_v33 = vmax.f32 %v413_v31, 0.0 }
 0x443   :  { %671 = vst.msk [vmem:[%s1011_s2 + $0x8] sm:$0x3] %vm15_vm0, %v414_v33  ;;  %785 = vmatmul.mubr.msk.f32.vlgmr.msra.gmra.mrb[4].mxu1 %vm23_vm2, %v414_v33 }
 0x444   :  { %853 = vmatpush3.bf16.msra.mxu1 %v892_v5  ;;  %806 = vmatprep.mubr.msk.f32.mxu1 %vm861_vm1, %v862_v4 }
 0x445   :  { %854 = vmatprep.subr.bf16.mxu1 %v860_v0 }
 0x448   :  { %856 = vmatpush3.bf16.msra.mxu1 %v901_v7 }
 0x516   :  { %v488_v35 = vpop.f32.mrb[4].mxu1 }
 0x517   :  { %v492_v36 = vadd.f32 %v672_v34, %v488_v35  ;;  %v786_v37 = vpop.f32.mrb[5].mxu1 }
 0x519   :  { %v493_v38 = vmax.f32 %v492_v36, 0.0 }
 0x51b   :  { %674 = vst.msk [vmem:[%s1011_s2 + $0xa] sm:$0x3] %vm15_vm0, %v493_v38  ;;  %796 = vmatmul.mubr.msk.f32.vlgmr.msra.gmra.mrb[6].mxu0 %vm23_vm2, %v493_v38 }
 0x5ee   :  { %v567_v40 = vpop.f32.mrb[6].mxu0 }
 0x5ef   :  { %v571_v41 = vadd.f32 %v675_v39, %v567_v40  ;;  %v797_v42 = vpop.f32.mrb[7].mxu0 }
 0x5f1   :  { %v572_v43 = vmax.f32 %v571_v41, 0.0 }
 0x5f3   :  { %677 = vst.msk [vmem:[%s1011_s2 + $0xc] sm:$0x3] %vm15_vm0, %v572_v43  ;;  %807 = vmatmul.mubr.msk.f32.vlgmr.msra.gmra.mrb[6].mxu1 %vm23_vm2, %v572_v43 }
 0x6c6   :  { %v646_v45 = vpop.f32.mrb[6].mxu1 }
 0x6c7   :  { %v650_v46 = vadd.f32 %v678_v44, %v646_v45  ;;  %v808_v47 = vpop.f32.mrb[7].mxu1 }
 0x6c9   :  { %v651_v48 = vmax.f32 %v650_v46, 0.0 }
 0x6cb   :  { %680 = vst.msk [vmem:[%s1011_s2 + $0xe] sm:$0x3] %vm15_vm0, %v651_v48  ;;  %654 = vst.msk [vmem:[#allocation2] sm:$0x3] %vm15_vm0, %v651_v48 }

</bundles_post_ra>
